<compile_context>
chip_gen: v7x
topology: tpu7x:2x2x1
jax: 0.10.0
libtpu: 0.0.40
codegen_flags: <defaults>
</compile_context>

<pallas_src>
import functools

import jax
import jax.numpy as jnp
from jax.experimental import pallas as pl
from jax.experimental.pallas import tpu as pltpu

LANES = 128
SUBLANES = 8


def _mse_partial_kernel(x_ref, t_ref, out_ref, acc_ref, *,
                        tile_rows, steps_per_slice, valid_rows, need_mask):
    """Per-slice partial sum of squared differences, accumulated in an (8,128) vreg-shaped scratch."""
    s = pl.program_id(0)          # slice (parallel axis -> TensorCores on v7x)
    k = pl.program_id(1)          # streaming/reduction axis

    @pl.when(k == 0)
    def _():
        acc_ref[...] = jnp.zeros_like(acc_ref)

    d = x_ref[...].astype(jnp.float32) - t_ref[...].astype(jnp.float32)

    if need_mask:
        # Rows beyond the true data (ragged last block / clamped duplicate block)
        # contain unspecified data -> zero them before squaring.
        base = (s * steps_per_slice + k) * tile_rows
        row_ids = base + jax.lax.broadcasted_iota(jnp.int32, (tile_rows, LANES), 0)
        d = jnp.where(row_ids < valid_rows, d, 0.0)

    sq = d * d
    # Fold (tile_rows, 128) down to (8, 128) with plain VPU adds (no XLU scalar reduce).
    acc_ref[...] += sq.reshape(tile_rows // SUBLANES, SUBLANES, LANES).sum(axis=0)

    @pl.when(k == pl.num_programs(1) - 1)
    def _():
        out_ref[...] = acc_ref[...]


def content_loss_forward(in_feat, target, *, tile_rows=2048):
    """Returns (loss, in_feat) — matching ContentLoss.forward (loss stored, input returned)."""
    assert in_feat.shape == target.shape, "in_feat / target shapes must match"
    n = in_feat.size

    # Flatten (free) and present a lane-dense (rows, 128) view.
    x_flat = in_feat.reshape(-1)
    t_flat = target.reshape(-1)
    rows = pl.cdiv(n, LANES)
    tail_pad = rows * LANES - n
    if tail_pad:
        # Only when n is not lane-aligned; pad is < 128 zero elements (zeros add 0 to the sum).
        x_flat = jnp.pad(x_flat, (0, tail_pad))
        t_flat = jnp.pad(t_flat, (0, tail_pad))
    x2d = x_flat.reshape(rows, LANES)
    t2d = t_flat.reshape(rows, LANES)

    # Effective tile: multiple of 8 sublanes, no bigger than the (rounded-up) data.
    tr = int(tile_rows)
    tr = max(SUBLANES, min(tr, pl.cdiv(rows, SUBLANES) * SUBLANES))
    tr = pl.cdiv(tr, SUBLANES) * SUBLANES

    total_blocks = pl.cdiv(rows, tr)
    # Split across both TensorCores on v7x when there is enough work; harmless (outer loop) on v5e/v6e.
    num_slices = 2 if total_blocks >= 4 else 1
    steps = pl.cdiv(total_blocks, num_slices)
    # Masking needed iff logical coverage (slices*steps*tile_rows) exceeds real rows.
    need_mask = (num_slices * steps * tr) != rows

    kernel = functools.partial(
        _mse_partial_kernel,
        tile_rows=tr,
        steps_per_slice=steps,
        valid_rows=rows,
        need_mask=need_mask,
    )

    def in_map(s, k):
        # Clamp so a fully-out-of-range logical block re-reads the last real block;
        # its contribution is zeroed by the in-kernel mask.
        return (jnp.minimum(s * steps + k, total_blocks - 1), 0)

    partial_sums = pl.pallas_call(
        kernel,
        out_shape=jax.ShapeDtypeStruct((num_slices * SUBLANES, LANES), jnp.float32),
        grid_spec=pltpu.PrefetchScalarGridSpec(
            num_scalar_prefetch=0,
            grid=(num_slices, steps),
            in_specs=[
                pl.BlockSpec((tr, LANES), in_map),
                pl.BlockSpec((tr, LANES), in_map),
            ],
            out_specs=pl.BlockSpec((SUBLANES, LANES), lambda s, k: (s, 0)),
            scratch_shapes=[pltpu.VMEM((SUBLANES, LANES), jnp.float32)],
        ),
        compiler_params=pltpu.CompilerParams(
            dimension_semantics=("parallel", "arbitrary"),
        ),
    )(x2d, t2d)

    # Tiny final combine (at most 2*8*128 floats) + mean normalization by the TRUE element count.
    loss = jnp.sum(partial_sums) * (1.0 / float(n))
    return loss, in_feat


if __name__ == "__main__":
    key = jax.random.PRNGKey(0)
    k1, k2 = jax.random.split(key)

    fwd = jax.jit(content_loss_forward, static_argnames=("tile_rows",))

    # 1) Small NCHW feature map (lane-aligned element count, single block).
    x = jax.random.normal(k1, (2, 4, 16, 16), dtype=jnp.float32)
    target = jax.random.normal(k2, (2, 4, 16, 16), dtype=jnp.float32)
    loss, out = fwd(x, target)
    jax.block_until_ready((loss, out))
    ref_loss = jnp.mean((x - target) ** 2)
    assert jnp.allclose(loss, ref_loss, rtol=1e-5, atol=1e-6), (loss, ref_loss)
    assert jnp.array_equal(out, x)

    # 2) Ragged element count (exercises tail pad + in-kernel row mask).
    k3, k4 = jax.random.split(k2)
    xr = jax.random.normal(k3, (1, 3, 37, 29), dtype=jnp.float32)
    tr_ = jax.random.normal(k4, (1, 3, 37, 29), dtype=jnp.float32)
    loss_r, out_r = fwd(xr, tr_)
    jax.block_until_ready((loss_r, out_r))
    ref_r = jnp.mean((xr - tr_) ** 2)
    assert jnp.allclose(loss_r, ref_r, rtol=1e-5, atol=1e-6), (loss_r, ref_r)
    assert jnp.array_equal(out_r, xr)

    # 3) Multi-block case with a forced small tile (exercises the 2-slice parallel split).
    k5, k6 = jax.random.split(k4)
    xb = jax.random.normal(k5, (4, 64, 32, 32), dtype=jnp.float32)
    tb = jax.random.normal(k6, (4, 64, 32, 32), dtype=jnp.float32)
    loss_b, out_b = fwd(xb, tb, tile_rows=128)
    jax.block_until_ready((loss_b, out_b))
    ref_b = jnp.mean((xb - tb) ** 2)
    assert jnp.allclose(loss_b, ref_b, rtol=1e-5, atol=1e-6), (loss_b, ref_b)
    assert jnp.array_equal(out_b, xb)

    print("KERNEL_OK")
</pallas_src>

<mosaic_0001>
module attributes {stable_mosaic.version = 11 : i64} {
  func.func @_mse_partial_kernel(%arg0: i32, %arg1: i32, %arg2: memref<16x128xf32, #tpu.memory_space<vmem>>, %arg3: memref<16x128xf32, #tpu.memory_space<vmem>>, %arg4: memref<8x128xf32, #tpu.memory_space<vmem>>, %arg5: memref<8x128xf32, #tpu.memory_space<vmem>>) attributes {dimension_semantics = [#tpu.dimension_semantics<parallel>, #tpu.dimension_semantics<arbitrary>], iteration_bounds = array<i64: 1, 1>, scalar_prefetch = 0 : i64, scratch_operands = 1 : i64, tpu.core_type = #tpu.core_type<tc>, window_params = [{transform_indices = @transform_0, window_bounds = array<i64: 16, 128>}, {transform_indices = @transform_1, window_bounds = array<i64: 16, 128>}, {transform_indices = @transform_2, window_bounds = array<i64: 8, 128>}]} {
    %c0_i32 = arith.constant 0 : i32
    %0 = arith.cmpi eq, %arg1, %c0_i32 : i32
    %1 = arith.extui %0 : i1 to i32
    %c0_i32_0 = arith.constant 0 : i32
    %2 = arith.cmpi ne, %1, %c0_i32_0 : i32
    scf.if %2 {
      %cst_10 = arith.constant 0.000000e+00 : f32
      %15 = vector.broadcast %cst_10 : f32 to vector<8x128xf32>
      %c0_11 = arith.constant 0 : index
      %c0_12 = arith.constant 0 : index
      %16 = vector.load %arg5[%c0_11, %c0_12] : memref<8x128xf32, #tpu.memory_space<vmem>>, vector<8x128xf32>
      tpu.vector_store %arg5[%c0_11, %c0_12], %15 {strides = array<i32>} : memref<8x128xf32, #tpu.memory_space<vmem>>, vector<8x128xf32>,
    } else {
    }
    %c0 = arith.constant 0 : index
    %c0_1 = arith.constant 0 : index
    %3 = vector.load %arg2[%c0, %c0_1] : memref<16x128xf32, #tpu.memory_space<vmem>>, vector<16x128xf32>
    %c0_2 = arith.constant 0 : index
    %c0_3 = arith.constant 0 : index
    %4 = vector.load %arg3[%c0_2, %c0_3] : memref<16x128xf32, #tpu.memory_space<vmem>>, vector<16x128xf32>
    %5 = arith.subf %3, %4 : vector<16x128xf32>
    %6 = arith.mulf %5, %5 : vector<16x128xf32>
    %c0_4 = arith.constant 0 : index
    %c0_5 = arith.constant 0 : index
    %7 = vector.load %arg5[%c0_4, %c0_5] : memref<8x128xf32, #tpu.memory_space<vmem>>, vector<8x128xf32>
    %8 = vector.shape_cast %6 : vector<16x128xf32> to vector<2x8x128xf32>
    %cst = arith.constant dense<0.000000e+00> : vector<8x128xf32>
    %9 = vector.multi_reduction <add>, %8, %cst [0] : vector<2x8x128xf32> to vector<8x128xf32>
    %10 = arith.addf %7, %9 : vector<8x128xf32>
    %c0_6 = arith.constant 0 : index
    %c0_7 = arith.constant 0 : index
    %11 = vector.load %arg5[%c0_6, %c0_7] : memref<8x128xf32, #tpu.memory_space<vmem>>, vector<8x128xf32>
    tpu.vector_store %arg5[%c0_6, %c0_7], %10 {strides = array<i32>} : memref<8x128xf32, #tpu.memory_space<vmem>>, vector<8x128xf32>,
    %c0_i32_8 = arith.constant 0 : i32
    %12 = arith.cmpi eq, %arg1, %c0_i32_8 : i32
    %13 = arith.extui %12 : i1 to i32
    %c0_i32_9 = arith.constant 0 : i32
    %14 = arith.cmpi ne, %13, %c0_i32_9 : i32
    scf.if %14 {
      %c0_10 = arith.constant 0 : index
      %c0_11 = arith.constant 0 : index
      %15 = vector.load %arg5[%c0_10, %c0_11] : memref<8x128xf32, #tpu.memory_space<vmem>>, vector<8x128xf32>
      %c0_12 = arith.constant 0 : index
      %c0_13 = arith.constant 0 : index
      %16 = vector.load %arg4[%c0_12, %c0_13] : memref<8x128xf32, #tpu.memory_space<vmem>>, vector<8x128xf32>
      tpu.vector_store %arg4[%c0_12, %c0_13], %15 {strides = array<i32>} : memref<8x128xf32, #tpu.memory_space<vmem>>, vector<8x128xf32>,
    } else {
    }
    return
  }
  func.func @transform_0(%arg0: i32, %arg1: i32) -> (i32, i32) {
    %c1_i32 = arith.constant 1 : i32
    %0 = arith.muli %arg0, %c1_i32 : i32
    %1 = arith.addi %0, %arg1 : i32
    %c0_i32 = arith.constant 0 : i32
    %2 = arith.minsi %1, %c0_i32 : i32
    %c0_i32_0 = arith.constant 0 : i32
    %c0_i32_1 = arith.constant 0 : i32
    return %2, %c0_i32_0 : i32, i32
  }
  func.func @transform_1(%arg0: i32, %arg1: i32) -> (i32, i32) {
    %c1_i32 = arith.constant 1 : i32
    %0 = arith.muli %arg0, %c1_i32 : i32
    %1 = arith.addi %0, %arg1 : i32
    %c0_i32 = arith.constant 0 : i32
    %2 = arith.minsi %1, %c0_i32 : i32
    %c0_i32_0 = arith.constant 0 : i32
    %c0_i32_1 = arith.constant 0 : i32
    return %2, %c0_i32_0 : i32, i32
  }
  func.func @transform_2(%arg0: i32, %arg1: i32) -> (i32, i32) {
    %c0_i32 = arith.constant 0 : i32
    %c0_i32_0 = arith.constant 0 : i32
    return %arg0, %c0_i32 : i32, i32
  }
}

</mosaic_0001>

<bundles_post_ra>
// kernel: content_loss_forward.1
= control target key start
LH: loop header
LB: loop body
LE: loop exit
PB: predicated region body
PF: predicated region fallthrough
CT: control target
= control target key end

     0   :  { %s143_s0 = inlined_call_operand.vmem [shape: f32[16,128], index: 0, kind: input, shape index: {}]   ;;  %s144_s1 = inlined_call_operand.vmem [shape: f32[16,128], index: 1, kind: input, shape index: {}]   ;;  %s145_s2 = inlined_call_operand.vmem [shape: f32[8,128], index: 2, kind: output, shape index: {}]  }
   0x1   :  { %v80_v0 = vld [vmem:[%s143_s0] sm:$0xff]  ;;  %v81_v1 = vld [vmem:[%s143_s0 + $0x8] sm:$0xff] }
   0x2   :  { %v82_v2 = vld [vmem:[%s144_s1] sm:$0xff]  ;;  %v83_v3 = vld [vmem:[%s144_s1 + $0x8] sm:$0xff] }
   0x3   :  { %v84_v4 = vsub.f32 %v80_v0, %v82_v2  ;;  %v85_v5 = vsub.f32 %v81_v1, %v83_v3 }
   0x5   :  { %v86_v6 = vmul.f32 %v84_v4, %v84_v4  ;;  %v87_v7 = vmul.f32 %v85_v5, %v85_v5 }
   0x7   :  { %v89_v8 = vadd.f32 %v87_v7, %v86_v6 }
   0x9   :  { %96 = vst [vmem:[%s145_s2] sm:$0xff] %v89_v8 }

</bundles_post_ra>
